<compile_context>
chip_gen: v7x
topology: tpu7x:2x2x1
jax: 0.10.0
libtpu: 0.0.40
codegen_flags: <defaults>
</compile_context>

<pallas_src>
import functools

import jax
import jax.numpy as jnp
from jax.experimental import pallas as pl
from jax.experimental.pallas import tpu as pltpu


def _sep_bn_train_kernel(x_ref, w_ref, b_ref, rm_ref, rv_ref,
                         y_ref, new_rm_ref, new_rv_ref, *,
                         eps, momentum, n, use_mxu_reduce):
    """One (N, TILE_C) feature tile of one timestep of training-mode BN.

    x_ref  : (N, TILE_C)     input tile (timestep axis squeezed)
    w_ref  : (1, TILE_C)     gamma
    b_ref  : (1, TILE_C)     beta
    rm_ref : (1, 1, TILE_C)  running-mean row for this timestep
    rv_ref : (1, 1, TILE_C)  running-var  row for this timestep
    y_ref  : (N, TILE_C)     normalized output tile
    new_rm_ref / new_rv_ref : (1, 1, TILE_C) updated running-stat rows
                              (written in place into the stacked buffers)
    """
    x = x_ref[...].astype(jnp.float32)                      # (N, TILE_C)
    inv_n = jnp.float32(1.0 / n)

    # Mean, then centered sum of squares: two cheap passes over the
    # VMEM-resident tile; avoids the E[x^2] - mean^2 cancellation.
    if use_mxu_reduce:
        # Large N: do the cross-sublane reduction on the otherwise-idle MXU.
        ones = jnp.ones((1, n), dtype=jnp.float32)
        s = jnp.dot(ones, x, preferred_element_type=jnp.float32)
    else:
        s = jnp.sum(x, axis=0, keepdims=True)               # (1, TILE_C)
    mean = s * inv_n
    centered = x - mean
    sq = centered * centered
    if use_mxu_reduce:
        ss = jnp.dot(ones, sq, preferred_element_type=jnp.float32)
    else:
        ss = jnp.sum(sq, axis=0, keepdims=True)
    var_biased = ss * inv_n

    inv_std = jax.lax.rsqrt(var_biased + jnp.float32(eps))  # (1, TILE_C)
    w = w_ref[...].astype(jnp.float32)
    b = b_ref[...].astype(jnp.float32)
    y_ref[...] = (centered * (inv_std * w) + b).astype(y_ref.dtype)

    # Running-stat update (PyTorch uses the unbiased variance here).
    # NOTE: for n == 1 we keep the biased variance (PyTorch would give NaN).
    bessel = jnp.float32(n / (n - 1)) if n > 1 else jnp.float32(1.0)
    var_unbiased = var_biased * bessel
    m = jnp.float32(momentum)
    rm = rm_ref[0].astype(jnp.float32)                      # (1, TILE_C)
    rv = rv_ref[0].astype(jnp.float32)
    new_rm = (1.0 - m) * rm + m * mean
    new_rv = (1.0 - m) * rv + m * var_unbiased
    new_rm_ref[...] = new_rm[None].astype(new_rm_ref.dtype)
    new_rv_ref[...] = new_rv[None].astype(new_rv_ref.dtype)


def _tpu_vmem_capacity_bytes():
    try:
        cap = getattr(pltpu.get_tpu_info(), "vmem_capacity_bytes", None)
        if cap:
            return int(cap)
    except Exception:
        pass
    return 64 << 20  # conservative default: v7x per-TensorCore VMEM


def _per_col_vmem_bytes(n, in_bytes, out_bytes):
    # Double-buffered x and y tiles, plus ~3 f32 temporaries (upcast x,
    # centered, centered^2) live during the reduction.
    return 2 * n * (in_bytes + out_bytes) + 3 * n * 4 + 64


def _choose_tile_c(n, c, in_bytes, out_bytes):
    """Pick a lane-dense (multiple-of-128) feature-tile width.

    Largest divisor of C that fits a generation-aware VMEM budget, but prefer
    >= 2 tiles (so the "parallel" feature axis can shard across both
    TensorCores on v7x) as long as each grid step still moves >= ~2 MiB of
    x + y HBM traffic (amortizes the ~0.35 us per-step overhead; target is
    ~1/2/4 MiB on v5e/v6e/v7x).
    """
    assert c % 128 == 0
    per_col = _per_col_vmem_bytes(n, in_bytes, out_bytes)
    budget = max(2 << 20, min(_tpu_vmem_capacity_bytes() // 4, 24 << 20))
    max_cols = max(128, budget // per_col)
    divisors = [d for d in range(128, c + 1, 128) if c % d == 0 and d <= max_cols]
    if not divisors:
        return 128
    min_step_bytes = 2 << 20
    multi = [d for d in divisors
             if (c // d) >= 2 and d * n * (in_bytes + out_bytes) >= min_step_bytes]
    return max(multi) if multi else max(divisors)


def _sep_bn_pallas(x3, weight, bias, running_mean_all, running_var_all, *,
                   t_offset, eps, momentum, tile_c=None):
    """Core call: x3 is (T, N, C); timestep t uses/updates buffer row t_offset+t."""
    t_steps, n, c = x3.shape
    max_length, c_rm = running_mean_all.shape
    if c != c_rm:
        raise ValueError('got {}-feature tensor, expected {}'.format(c, c_rm))
    if not (0 <= t_offset and t_offset + t_steps <= max_length):
        raise ValueError('timesteps [{}, {}) exceed max_length={}'.format(
            t_offset, t_offset + t_steps, max_length))

    in_bytes = x3.dtype.itemsize
    out_bytes = in_bytes

    # Pad the feature axis to a multiple of 128 -> unmasked lane-dense stores.
    c_pad = (-c) % 128
    cp = c + c_pad
    if c_pad:
        x3 = jnp.pad(x3, ((0, 0), (0, 0), (0, c_pad)))
        weight = jnp.pad(weight, (0, c_pad))
        bias = jnp.pad(bias, (0, c_pad))
        running_mean_all = jnp.pad(running_mean_all, ((0, 0), (0, c_pad)))
        running_var_all = jnp.pad(running_var_all, ((0, 0), (0, c_pad)),
                                  constant_values=1.0)

    if tile_c is None:
        tile_c = _choose_tile_c(n, cp, in_bytes, out_bytes)
    if cp % tile_c != 0:
        raise ValueError('tile_c={} must divide padded num_features={}'.format(
            tile_c, cp))
    num_tiles = cp // tile_c

    w2 = weight.reshape(1, cp)
    b2 = bias.reshape(1, cp)
    rm3 = running_mean_all.reshape(max_length, 1, cp)
    rv3 = running_var_all.reshape(max_length, 1, cp)

    kernel = functools.partial(
        _sep_bn_train_kernel, eps=float(eps), momentum=float(momentum),
        n=n, use_mxu_reduce=(n >= 1024))

    x_spec = pl.BlockSpec((None, n, tile_c), lambda j, t: (t, 0, j))
    vec_spec = pl.BlockSpec((1, tile_c), lambda j, t: (0, j))
    stat_spec = pl.BlockSpec((1, 1, tile_c), lambda j, t: (t_offset + t, 0, j))

    tile_bytes = _per_col_vmem_bytes(n, in_bytes, out_bytes) * tile_c
    cap = _tpu_vmem_capacity_bytes()
    vmem_limit = int(min(cap * 3 // 4, max(32 << 20, 2 * tile_bytes)))

    y, new_rm, new_rv = pl.pallas_call(
        kernel,
        grid_spec=pltpu.PrefetchScalarGridSpec(
            num_scalar_prefetch=0,
            grid=(num_tiles, t_steps),
            in_specs=[x_spec, vec_spec, vec_spec, stat_spec, stat_spec],
            out_specs=(x_spec, stat_spec, stat_spec),
        ),
        out_shape=(
            jax.ShapeDtypeStruct((t_steps, n, cp), x3.dtype),
            jax.ShapeDtypeStruct((max_length, 1, cp), running_mean_all.dtype),
            jax.ShapeDtypeStruct((max_length, 1, cp), running_var_all.dtype),
        ),
        # In-place writeback of the running stats: args are
        # (x3, w2, b2, rm3, rv3) -> rm3/rv3 alias outputs 1/2. Rows outside
        # [t_offset, t_offset + T) are never written and keep their values.
        input_output_aliases={3: 1, 4: 2},
        compiler_params=pltpu.CompilerParams(
            dimension_semantics=("parallel", "parallel"),
            vmem_limit_bytes=vmem_limit),
    )(x3, w2, b2, rm3, rv3)

    new_rm = new_rm.reshape(max_length, cp)
    new_rv = new_rv.reshape(max_length, cp)
    if c_pad:
        y = y[..., :c]
        new_rm = new_rm[:, :c]
        new_rv = new_rv[:, :c]
    return y, new_rm, new_rv


def separated_batch_norm_1d(x, weight, bias, running_mean_all, running_var_all,
                            time, *, eps=1e-3, momentum=0.1, tile_c=None):
    """SeparatedBatchNorm1d.forward(input_, time) in training mode.

    x:                (N, C) float32 or bfloat16
    weight, bias:     (C,)
    running_mean_all: (max_length, C) stacked per-timestep buffers
    running_var_all:  (max_length, C)
    time:             static Python int (the module selects the buffer via
                      getattr, so it is static in PyTorch too); clamped to
                      max_length - 1 like the module.

    Returns (y, updated_running_mean_all, updated_running_var_all); only row
    `min(time, max_length-1)` of the returned buffers differs from the input.
    """
    max_length = running_mean_all.shape[0]
    t = min(int(time), max_length - 1)
    y3, new_rm, new_rv = _sep_bn_pallas(
        x[None], weight, bias, running_mean_all, running_var_all,
        t_offset=t, eps=eps, momentum=momentum, tile_c=tile_c)
    return y3[0], new_rm, new_rv


def separated_batch_norm_1d_seq(x_seq, weight, bias, running_mean_all,
                                running_var_all, *, time_offset=0,
                                eps=1e-3, momentum=0.1, tile_c=None):
    """Fused version for a whole sequence: one pallas_call for T timesteps.

    x_seq: (T, N, C); timestep t uses/updates buffer row time_offset + t.
    Requires time_offset + T <= max_length (distinct row per step).
    """
    # TODO(synk): for the full BnLSTM, fuse this BN directly into the LSTM cell
    # kernel; here we only fuse the per-timestep normalizations together.
    return _sep_bn_pallas(x_seq, weight, bias, running_mean_all,
                          running_var_all, t_offset=int(time_offset),
                          eps=eps, momentum=momentum, tile_c=tile_c)


def _reference_bn(x, weight, bias, eps):
    x = x.astype(jnp.float32)
    mean = jnp.mean(x, axis=0, keepdims=True)
    var = jnp.mean((x - mean) ** 2, axis=0, keepdims=True)
    return (x - mean) / jnp.sqrt(var + eps) * weight[None, :] + bias[None, :]


if __name__ == "__main__":
    # Shapes consistent with BnLSTM usage: the module normalizes the (N, 4*H)
    # gate pre-activations; hidden=32 -> num_features=128 (lane-dense).
    num_features = 128
    max_length = 8
    eps, momentum = 1e-3, 0.1
    batch = 8

    key = jax.random.PRNGKey(0)
    kx, kw, ks = jax.random.split(key, 3)

    # reset_parameters(): weight ~ U[0,1), bias = 0, running_mean_i = 0,
    # running_var_i = 1.
    weight = jax.random.uniform(kw, (num_features,), dtype=jnp.float32)
    bias = jnp.zeros((num_features,), dtype=jnp.float32)
    rm_all = jnp.zeros((max_length, num_features), dtype=jnp.float32)
    rv_all = jnp.ones((max_length, num_features), dtype=jnp.float32)

    # --- 1. single-timestep forward (module contract), in-place stat update ---
    x = jax.random.normal(kx, (batch, num_features), dtype=jnp.float32)
    t = 3
    y, new_rm, new_rv = separated_batch_norm_1d(
        x, weight, bias, rm_all, rv_all, t, eps=eps, momentum=momentum)
    jax.block_until_ready((y, new_rm, new_rv))

    y_ref = _reference_bn(x, weight, bias, eps)
    bm = jnp.mean(x, axis=0)
    bv = jnp.var(x, axis=0, ddof=1)
    assert jnp.allclose(y, y_ref, atol=1e-4, rtol=1e-4), "output mismatch"
    exp_rm = rm_all.at[t].set(momentum * bm)
    exp_rv = rv_all.at[t].set((1.0 - momentum) * 1.0 + momentum * bv)
    assert jnp.allclose(new_rm, exp_rm, atol=1e-5), "running mean mismatch"
    assert jnp.allclose(new_rv, exp_rv, atol=1e-4), "running var mismatch"

    # --- 2. fused whole-sequence forward (T timesteps, one pallas_call) ---
    x_seq = jax.random.normal(ks, (max_length, batch, num_features),
                              dtype=jnp.float32)
    y_seq, rm_seq, rv_seq = separated_batch_norm_1d_seq(
        x_seq, weight, bias, rm_all, rv_all, eps=eps, momentum=momentum)
    jax.block_until_ready((y_seq, rm_seq, rv_seq))
    for tt in range(max_length):
        xt = x_seq[tt]
        assert jnp.allclose(y_seq[tt], _reference_bn(xt, weight, bias, eps),
                            atol=1e-4, rtol=1e-4), "seq output mismatch"
        assert jnp.allclose(rm_seq[tt], momentum * jnp.mean(xt, axis=0),
                            atol=1e-5), "seq running mean mismatch"
        assert jnp.allclose(rv_seq[tt],
                            (1.0 - momentum) + momentum * jnp.var(xt, axis=0, ddof=1),
                            atol=1e-4), "seq running var mismatch"

    # --- 3. large batch: exercises the MXU reduction path + 2-tile grid ---
    n_big, c_big = 1024, 256
    xb = jax.random.normal(jax.random.PRNGKey(1), (n_big, c_big), jnp.float32)
    wb = jax.random.uniform(jax.random.PRNGKey(2), (c_big,), dtype=jnp.float32)
    bb = 0.1 * jax.random.normal(jax.random.PRNGKey(3), (c_big,), jnp.float32)
    rmb = jnp.zeros((max_length, c_big), jnp.float32)
    rvb = jnp.ones((max_length, c_big), jnp.float32)
    yb, _, _ = separated_batch_norm_1d(xb, wb, bb, rmb, rvb, 0,
                                       eps=eps, momentum=momentum, tile_c=128)
    jax.block_until_ready(yb)
    assert jnp.allclose(yb, _reference_bn(xb, wb, bb, eps),
                        atol=1e-3, rtol=1e-3), "large-N output mismatch"

    # --- 4. non-multiple-of-128 feature count: exercises the padding path ---
    c_odd = 96
    xo = jax.random.normal(jax.random.PRNGKey(4), (batch, c_odd), jnp.float32)
    wo = jax.random.uniform(jax.random.PRNGKey(5), (c_odd,), dtype=jnp.float32)
    bo = jnp.zeros((c_odd,), jnp.float32)
    rmo = jnp.zeros((max_length, c_odd), jnp.float32)
    rvo = jnp.ones((max_length, c_odd), jnp.float32)
    yo, rmo2, rvo2 = separated_batch_norm_1d(xo, wo, bo, rmo, rvo, 2,
                                             eps=eps, momentum=momentum)
    jax.block_until_ready(yo)
    assert yo.shape == (batch, c_odd) and rmo2.shape == (max_length, c_odd)
    assert jnp.allclose(yo, _reference_bn(xo, wo, bo, eps),
                        atol=1e-4, rtol=1e-4), "padded-C output mismatch"

    # --- 5. bf16 activations (f32 accumulation inside the kernel) ---
    xh = x.astype(jnp.bfloat16)
    yh, _, _ = separated_batch_norm_1d(xh, weight, bias, rm_all, rv_all, t,
                                       eps=eps, momentum=momentum)
    jax.block_until_ready(yh)
    assert jnp.allclose(yh.astype(jnp.float32),
                        _reference_bn(xh.astype(jnp.float32), weight, bias, eps),
                        atol=5e-2, rtol=5e-2), "bf16 output mismatch"

    # TODO(synk): eval-mode (module.eval()) branch of functional.batch_norm is
    # not implemented; the module's default training=True path is covered.
    print("KERNEL_OK")
</pallas_src>

<mosaic_0001>
module attributes {stable_mosaic.version = 11 : i64} {
  func.func @_sep_bn_train_kernel(%arg0: i32, %arg1: i32, %arg2: memref<1x8x128xf32, #tpu.memory_space<vmem>>, %arg3: memref<1x128xf32, #tpu.memory_space<vmem>>, %arg4: memref<1x128xf32, #tpu.memory_space<vmem>>, %arg5: memref<1x1x128xf32, #tpu.memory_space<vmem>>, %arg6: memref<1x1x128xf32, #tpu.memory_space<vmem>>, %arg7: memref<1x8x128xf32, #tpu.memory_space<vmem>>, %arg8: memref<1x1x128xf32, #tpu.memory_space<vmem>>, %arg9: memref<1x1x128xf32, #tpu.memory_space<vmem>>) attributes {dimension_semantics = [#tpu.dimension_semantics<parallel>, #tpu.dimension_semantics<parallel>], iteration_bounds = array<i64: 1, 1>, scalar_prefetch = 0 : i64, scratch_operands = 0 : i64, tpu.core_type = #tpu.core_type<tc>, window_params = [{transform_indices = @transform_0, window_bounds = array<i64: 1, 8, 128>}, {transform_indices = @transform_1, window_bounds = array<i64: 1, 128>}, {transform_indices = @transform_2, window_bounds = array<i64: 1, 128>}, {transform_indices = @transform_3, window_bounds = array<i64: 1, 1, 128>}, {transform_indices = @transform_4, window_bounds = array<i64: 1, 1, 128>}, {transform_indices = @transform_5, window_bounds = array<i64: 1, 8, 128>}, {transform_indices = @transform_6, window_bounds = array<i64: 1, 1, 128>}, {transform_indices = @transform_7, window_bounds = array<i64: 1, 1, 128>}]} {
    %c0 = arith.constant 0 : index
    %c0_0 = arith.constant 0 : index
    %c0_1 = arith.constant 0 : index
    %0 = vector.load %arg2[%c0, %c0_0, %c0_1] : memref<1x8x128xf32, #tpu.memory_space<vmem>>, vector<1x8x128xf32>
    %1 = vector.shape_cast %0 : vector<1x8x128xf32> to vector<8x128xf32>
    %cst = arith.constant dense<0.000000e+00> : vector<128xf32>
    %2 = vector.multi_reduction <add>, %1, %cst [0] : vector<8x128xf32> to vector<128xf32>
    %3 = vector.shape_cast %2 : vector<128xf32> to vector<1x128xf32>
    %cst_2 = arith.constant 1.250000e-01 : f32
    %4 = vector.broadcast %cst_2 : f32 to vector<1x128xf32>
    %5 = arith.mulf %3, %4 : vector<1x128xf32>
    %6 = vector.broadcast %5 : vector<1x128xf32> to vector<8x128xf32>
    %7 = arith.subf %1, %6 : vector<8x128xf32>
    %8 = arith.mulf %7, %7 : vector<8x128xf32>
    %cst_3 = arith.constant dense<0.000000e+00> : vector<128xf32>
    %9 = vector.multi_reduction <add>, %8, %cst_3 [0] : vector<8x128xf32> to vector<128xf32>
    %10 = vector.shape_cast %9 : vector<128xf32> to vector<1x128xf32>
    %cst_4 = arith.constant 1.250000e-01 : f32
    %11 = vector.broadcast %cst_4 : f32 to vector<1x128xf32>
    %12 = arith.mulf %10, %11 : vector<1x128xf32>
    %cst_5 = arith.constant 1.000000e-03 : f32
    %13 = vector.broadcast %cst_5 : f32 to vector<1x128xf32>
    %14 = arith.addf %12, %13 : vector<1x128xf32>
    %15 = math.rsqrt %14 : vector<1x128xf32>
    %c0_6 = arith.constant 0 : index
    %c0_7 = arith.constant 0 : index
    %16 = vector.load %arg3[%c0_6, %c0_7] : memref<1x128xf32, #tpu.memory_space<vmem>>, vector<1x128xf32>
    %c0_8 = arith.constant 0 : index
    %c0_9 = arith.constant 0 : index
    %17 = vector.load %arg4[%c0_8, %c0_9] : memref<1x128xf32, #tpu.memory_space<vmem>>, vector<1x128xf32>
    %18 = arith.mulf %15, %16 : vector<1x128xf32>
    %19 = vector.broadcast %18 : vector<1x128xf32> to vector<8x128xf32>
    %20 = arith.mulf %7, %19 : vector<8x128xf32>
    %21 = vector.broadcast %17 : vector<1x128xf32> to vector<8x128xf32>
    %22 = arith.addf %20, %21 : vector<8x128xf32>
    %c0_10 = arith.constant 0 : index
    %c0_11 = arith.constant 0 : index
    %c0_12 = arith.constant 0 : index
    %23 = vector.load %arg7[%c0_10, %c0_11, %c0_12] : memref<1x8x128xf32, #tpu.memory_space<vmem>>, vector<1x8x128xf32>
    %24 = vector.shape_cast %23 : vector<1x8x128xf32> to vector<8x128xf32>
    %25 = vector.shape_cast %22 : vector<8x128xf32> to vector<1x8x128xf32>
    tpu.vector_store %arg7[%c0_10, %c0_11, %c0_12], %25 {strides = array<i32>} : memref<1x8x128xf32, #tpu.memory_space<vmem>>, vector<1x8x128xf32>,
    %cst_13 = arith.constant 1.14285719 : f32
    %26 = vector.broadcast %cst_13 : f32 to vector<1x128xf32>
    %27 = arith.mulf %12, %26 : vector<1x128xf32>
    %c0_14 = arith.constant 0 : index
    %c0_15 = arith.constant 0 : index
    %c0_16 = arith.constant 0 : index
    %28 = vector.load %arg5[%c0_14, %c0_15, %c0_16] : memref<1x1x128xf32, #tpu.memory_space<vmem>>, vector<1x1x128xf32>
    %29 = vector.shape_cast %28 : vector<1x1x128xf32> to vector<1x128xf32>
    %c0_17 = arith.constant 0 : index
    %c0_18 = arith.constant 0 : index
    %c0_19 = arith.constant 0 : index
    %30 = vector.load %arg6[%c0_17, %c0_18, %c0_19] : memref<1x1x128xf32, #tpu.memory_space<vmem>>, vector<1x1x128xf32>
    %31 = vector.shape_cast %30 : vector<1x1x128xf32> to vector<1x128xf32>
    %cst_20 = arith.constant 1.000000e+00 : f32
    %cst_21 = arith.constant 1.000000e-01 : f32
    %32 = arith.subf %cst_20, %cst_21 : f32
    %33 = vector.broadcast %32 : f32 to vector<1x128xf32>
    %34 = arith.mulf %33, %29 : vector<1x128xf32>
    %cst_22 = arith.constant 1.000000e-01 : f32
    %35 = vector.broadcast %cst_22 : f32 to vector<1x128xf32>
    %36 = arith.mulf %35, %5 : vector<1x128xf32>
    %37 = arith.addf %34, %36 : vector<1x128xf32>
    %cst_23 = arith.constant 1.000000e+00 : f32
    %cst_24 = arith.constant 1.000000e-01 : f32
    %38 = arith.subf %cst_23, %cst_24 : f32
    %39 = vector.broadcast %38 : f32 to vector<1x128xf32>
    %40 = arith.mulf %39, %31 : vector<1x128xf32>
    %cst_25 = arith.constant 1.000000e-01 : f32
    %41 = vector.broadcast %cst_25 : f32 to vector<1x128xf32>
    %42 = arith.mulf %41, %27 : vector<1x128xf32>
    %43 = arith.addf %40, %42 : vector<1x128xf32>
    %44 = vector.shape_cast %37 : vector<1x128xf32> to vector<1x1x128xf32>
    %c0_26 = arith.constant 0 : index
    %c0_27 = arith.constant 0 : index
    %c0_28 = arith.constant 0 : index
    %45 = vector.load %arg8[%c0_26, %c0_27, %c0_28] : memref<1x1x128xf32, #tpu.memory_space<vmem>>, vector<1x1x128xf32>
    tpu.vector_store %arg8[%c0_26, %c0_27, %c0_28], %44 {strides = array<i32>} : memref<1x1x128xf32, #tpu.memory_space<vmem>>, vector<1x1x128xf32>,
    %46 = vector.shape_cast %43 : vector<1x128xf32> to vector<1x1x128xf32>
    %c0_29 = arith.constant 0 : index
    %c0_30 = arith.constant 0 : index
    %c0_31 = arith.constant 0 : index
    %47 = vector.load %arg9[%c0_29, %c0_30, %c0_31] : memref<1x1x128xf32, #tpu.memory_space<vmem>>, vector<1x1x128xf32>
    tpu.vector_store %arg9[%c0_29, %c0_30, %c0_31], %46 {strides = array<i32>} : memref<1x1x128xf32, #tpu.memory_space<vmem>>, vector<1x1x128xf32>,
    return
  }
  func.func @transform_0(%arg0: i32, %arg1: i32) -> (i32, i32, i32) {
    %c0_i32 = arith.constant 0 : i32
    %c0_i32_0 = arith.constant 0 : i32
    return %arg1, %c0_i32, %arg0 : i32, i32, i32
  }
  func.func @transform_1(%arg0: i32, %arg1: i32) -> (i32, i32) {
    %c0_i32 = arith.constant 0 : i32
    %c0_i32_0 = arith.constant 0 : i32
    return %c0_i32, %arg0 : i32, i32
  }
  func.func @transform_2(%arg0: i32, %arg1: i32) -> (i32, i32) {
    %c0_i32 = arith.constant 0 : i32
    %c0_i32_0 = arith.constant 0 : i32
    return %c0_i32, %arg0 : i32, i32
  }
  func.func @transform_3(%arg0: i32, %arg1: i32) -> (i32, i32, i32) {
    %c3_i32 = arith.constant 3 : i32
    %0 = arith.addi %c3_i32, %arg1 : i32
    %c0_i32 = arith.constant 0 : i32
    %c0_i32_0 = arith.constant 0 : i32
    return %0, %c0_i32, %arg0 : i32, i32, i32
  }
  func.func @transform_4(%arg0: i32, %arg1: i32) -> (i32, i32, i32) {
    %c3_i32 = arith.constant 3 : i32
    %0 = arith.addi %c3_i32, %arg1 : i32
    %c0_i32 = arith.constant 0 : i32
    %c0_i32_0 = arith.constant 0 : i32
    return %0, %c0_i32, %arg0 : i32, i32, i32
  }
  func.func @transform_5(%arg0: i32, %arg1: i32) -> (i32, i32, i32) {
    %c0_i32 = arith.constant 0 : i32
    %c0_i32_0 = arith.constant 0 : i32
    return %arg1, %c0_i32, %arg0 : i32, i32, i32
  }
  func.func @transform_6(%arg0: i32, %arg1: i32) -> (i32, i32, i32) {
    %c3_i32 = arith.constant 3 : i32
    %0 = arith.addi %c3_i32, %arg1 : i32
    %c0_i32 = arith.constant 0 : i32
    %c0_i32_0 = arith.constant 0 : i32
    return %0, %c0_i32, %arg0 : i32, i32, i32
  }
  func.func @transform_7(%arg0: i32, %arg1: i32) -> (i32, i32, i32) {
    %c3_i32 = arith.constant 3 : i32
    %0 = arith.addi %c3_i32, %arg1 : i32
    %c0_i32 = arith.constant 0 : i32
    %c0_i32_0 = arith.constant 0 : i32
    return %0, %c0_i32, %arg0 : i32, i32, i32
  }
}

</mosaic_0001>

<bundles_post_ra>
// kernel: tpu_custom_call.1
= control target key start
LH: loop header
LB: loop body
LE: loop exit
PB: predicated region body
PF: predicated region fallthrough
CT: control target
= control target key end

     0   :  { %13 = vsyncpa [#allocation3], 0  ;;  %s421_s0 = inlined_call_operand.vmem [shape: f32[1,8,128], index: 0, kind: input, shape index: {}]   ;;  %s422_s1 = inlined_call_operand.vmem [shape: f32[1,128], index: 1, kind: input, shape index: {}]   ;;  %s423_s2 = inlined_call_operand.vmem [shape: f32[1,128], index: 2, kind: input, shape index: {}]   ;;  %s424_s3 = inlined_call_operand.hbm [shape: f32[8,1,128], index: 3, kind: input, shape index: {}, may-alias: {3,6}]   ;;  %s425_s4 = inlined_call_operand.hbm [shape: f32[8,1,128], index: 4, kind: input, shape index: {}, may-alias: {4,7}]   ;;  %s426_s5 = inlined_call_operand.hbm [shape: f32[1,8,128], index: 5, kind: output, shape index: {0}]   ;;  %s427_s6 = inlined_call_operand.hbm [shape: f32[8,1,128], index: 6, kind: output, shape index: {1}, may-alias: {3,6}]   ;;  %s428_s7 = inlined_call_operand.hbm [shape: f32[8,1,128], index: 7, kind: output, shape index: {2}, may-alias: {4,7}]  }
   0x1   :  { %14 = vsyncpa [#allocation6], 0 }
   0x2   :  { %15 = vsyncpa [#allocation4], 0 }
   0x3   :  { %16 = vsyncpa [#allocation9], 0  ;;  %s154_s26 = scalar_lea.hbm %s424_s3, 48  ;;  %s296_s27 = smov [#allocation2]  }
   0x4   :  { %s32_s28 = sshll.u32 %s296_s27, 4  ;;  %s347_s8 = scalar_lea.hbm %s425_s4, 48  ;;  %s33_s28 = int_to_ptr.vmem [resolvable:$true] %s32_s28 }
   0x5   :  { %s190_s11 = scalar_lea.hbm %s424_s3, 64  ;;  %s168_s14 = scalar_lea.hbm %s424_s3, 128 }
   0x6   :  { %p167_p0 = scmp.ne.s32.totalorder %s154_s26, %s190_s11  ;;  %p169_p1 = scmp.lt.u32.totalorder %s154_s26, %s424_s3 }
   0x7   :  { %p170_p2 = scmp.lt.u32.totalorder %s168_s14, %s190_s11  ;;  %p172_p4 = scmp.lt.u32.totalorder %s190_s11, %s154_s26 }
   0x9   :  { %p171_p3 = por %p170_p2, %p169_p1 }
   0xb   :  { %p173_p5 = por %p172_p4, %p171_p3 }
   0xd   :  { %p174_p6 = pnand %p173_p5, %p167_p0 }
   0xf   :  { %177 = shalt.err (!%p174_p6)
}
  0x10   :  { %s178_s17 = scalar_lea.vmem %s33_s28, 16  ;;  %s182_s18 = scalar_lea.vmem %s33_s28, 32 }
  0x11   :  { %p179_p7 = scmp.ne.s32.totalorder %s33_s28, %s178_s17  ;;  %p183_p8 = scmp.lt.s32.totalorder %s33_s28, %s33_s28 }
  0x12   :  { %p184_p9 = scmp.lt.s32.totalorder %s182_s18, %s178_s17 }
  0x14   :  { %p185_p10 = por %p184_p9, %p183_p8 }
  0x16   :  { %p186_p11 = pnand %p185_p10, %p179_p7 }
  0x18   :  { %189 = shalt.err (!%p186_p11)
}
  0x19   :  { %35 = dma.hbm_to_vmem [thread:$0]  %s154_s26, 16, %s33_s28, [#allocation3]  }
  0x1a   :  { %s297_s19 = smov [#allocation5]   ;;  %s215_s22 = scalar_lea.hbm %s425_s4, 64 }
  0x1b   :  { %s45_s3 = sshll.u32 %s297_s19, 4  ;;  %p192_p12 = scmp.ne.s32.totalorder %s347_s8, %s215_s22  ;;  %s46_s3 = int_to_ptr.vmem [resolvable:$true] %s45_s3 }
  0x1c   :  { %s193_s25 = scalar_lea.hbm %s425_s4, 128  ;;  %p194_p13 = scmp.lt.u32.totalorder %s347_s8, %s425_s4 }
  0x1d   :  { %p195_p0 = scmp.lt.u32.totalorder %s193_s25, %s215_s22  ;;  %p197_p2 = scmp.lt.u32.totalorder %s215_s22, %s347_s8 }
  0x1f   :  { %p196_p1 = por %p195_p0, %p194_p13 }
  0x21   :  { %p198_p3 = por %p197_p2, %p196_p1 }
  0x23   :  { %p199_p4 = pnand %p198_p3, %p192_p12 }
  0x25   :  { %202 = shalt.err (!%p199_p4)
}
  0x26   :  { %s203_s26 = scalar_lea.vmem %s46_s3, 16  ;;  %s207_s28 = scalar_lea.vmem %s46_s3, 32 }
  0x27   :  { %p204_p5 = scmp.ne.s32.totalorder %s46_s3, %s203_s26  ;;  %p208_p6 = scmp.lt.s32.totalorder %s46_s3, %s46_s3 }
  0x28   :  { %p209_p7 = scmp.lt.s32.totalorder %s207_s28, %s203_s26 }
  0x2a   :  { %p210_p8 = por %p209_p7, %p208_p6 }
  0x2c   :  { %p211_p9 = pnand %p210_p8, %p204_p5 }
  0x2e   :  { %214 = shalt.err (!%p211_p9)
}
  0x2f   :  { %48 = dma.hbm_to_vmem [thread:$0]  %s347_s8, 16, %s46_s3, [#allocation6]  }
  0x30   :  { %288 = dma.done.wait [#allocation3], 16  }
  0x31   :  { %289 = vsyncadd [#allocation3], 4294967280 }
  0x32   :  { %290 = dma.done.wait [#allocation6], 16  }
  0x33   :  { %291 = vsyncadd [#allocation6], 4294967280  ;;  %v59_v0 = vld [vmem:[%s421_s0] sm:$0xff]  ;;  %s298_s9 = smov [#allocation8]   ;;  %s156_s11 = scalar_lea.hbm %s427_s6, 48 }
  0x34   :  { %v60_v1 = vrot.slane %v59_v0, 4  ;;  %v95_v6 = vld [vmem:[#allocation2] sm:$0x1]  ;;  %s124_s10 = sshll.u32 %s298_s9, 4  ;;  %s125_s10 = int_to_ptr.vmem [resolvable:$true] %s124_s10 }
  0x35   :  { %v97_v9 = vmul.f32 0.9, %v95_v6  ;;  %s216_s12 = scalar_lea.vmem %s125_s10, 16  ;;  %s220_s13 = scalar_lea.vmem %s125_s10, 32 }
  0x36   :  { %v61_v2 = vadd.f32 %v60_v1, %v59_v0  ;;  %p217_p10 = scmp.ne.s32.totalorder %s125_s10, %s216_s12  ;;  %p221_p11 = scmp.lt.s32.totalorder %s125_s10, %s125_s10 }
  0x37   :  { %p222_p12 = scmp.lt.s32.totalorder %s220_s13, %s216_s12 }
  0x38   :  { %v62_v3 = vrot.slane %v61_v2, 2 }
  0x39   :  { %p223_p13 = por %p222_p12, %p221_p11 }
  0x3a   :  { %v63_v4 = vadd.f32 %v62_v3, %v61_v2 }
  0x3b   :  { %p224_p0 = pnand %p223_p13, %p217_p10 }
  0x3c   :  { %v64_v5 = vrot.slane %v63_v4, 1 }
  0x3e   :  { %v65_v7 = vadd.f32 %v64_v5, %v63_v4 }
  0x40   :  { %v66_v8 = vmul.f32 0.125, %v65_v7 }
  0x42   :  { %v98_v10 = vmul.f32 0.1, %v66_v8  ;;  %v374_v11 = vsub.f32 %v59_v0, %v66_v8 }
  0x44   :  { %v99_v12 = vadd.f32 %v98_v10, %v97_v9  ;;  %v68_v13 = vmul.f32 %v374_v11, %v374_v11 }
  0x46   :  { %103 = vst [vmem:[#allocation8] sm:$0x1] %v99_v12  ;;  %v69_v14 = vrot.slane %v68_v13, 4 }
  0x47   :  { %227 = shalt.err (!%p224_p0)
}
  0x48   :  { %s240_s16 = scalar_lea.hbm %s427_s6, 64  ;;  %s230_s19 = scalar_lea.hbm %s427_s6, 128 }
  0x49   :  { %p229_p1 = scmp.ne.s32.totalorder %s156_s11, %s240_s16  ;;  %p231_p2 = scmp.lt.u32.totalorder %s156_s11, %s427_s6 }
  0x4a   :  { %p232_p3 = scmp.lt.u32.totalorder %s230_s19, %s240_s16  ;;  %p234_p5 = scmp.lt.u32.totalorder %s240_s16, %s156_s11 }
  0x4c   :  { %p233_p4 = por %p232_p3, %p231_p2 }
  0x4e   :  { %p235_p6 = por %p234_p5, %p233_p4 }
  0x50   :  { %p236_p7 = pnand %p235_p6, %p229_p1 }
  0x52   :  { %239 = shalt.err (!%p236_p7)
}
  0x53   :  { %127 = dma.vmem_to_hbm [thread:$0]  %s125_s10, 16, %s156_s11, [#allocation9]   ;;  %v70_v15 = vadd.f32 %v69_v14, %v68_v13  ;;  %v96_v20 = vld [vmem:[#allocation5] sm:$0x1]  ;;  %v81_v26 = vlaneseq }
  0x54   :  { %v100_v24 = vmul.f32 0.9, %v96_v20  ;;  %s299_s21 = smov [#allocation10]   ;;  %s157_s24 = scalar_lea.hbm %s428_s7, 48 }
  0x55   :  { %v71_v16 = vrot.slane %v70_v15, 2  ;;  %s137_s22 = sshll.u32 %s299_s21, 4  ;;  %v82_v28 = vshrl.u32 %v81_v26, 7  ;;  %s138_s22 = int_to_ptr.vmem [resolvable:$true] %s137_s22 }
  0x56   :  { %s241_s25 = scalar_lea.vmem %s138_s22, 16  ;;  %s245_s27 = scalar_lea.vmem %s138_s22, 32 }
  0x57   :  { %v72_v17 = vadd.f32 %v71_v16, %v70_v15  ;;  %p242_p8 = scmp.ne.s32.totalorder %s138_s22, %s241_s25  ;;  %p246_p9 = scmp.lt.s32.totalorder %s138_s22, %s138_s22 }
  0x58   :  { %p247_p10 = scmp.lt.s32.totalorder %s245_s27, %s241_s25 }
  0x59   :  { %v73_v18 = vrot.slane %v72_v17, 1 }
  0x5a   :  { %p248_p11 = por %p247_p10, %p246_p9 }
  0x5b   :  { %v74_v19 = vadd.f32 %v73_v18, %v72_v17 }
  0x5c   :  { %p249_p12 = pnand %p248_p11, %p242_p8 }
  0x5d   :  { %v75_v21 = vmul.f32 0.125, %v74_v19 }
  0x5f   :  { %v76_v22 = vadd.f32 0.001, %v75_v21  ;;  %v94_v23 = vmul.f32 1.1428572, %v75_v21 }
  0x61   :  { %164 = vrsqrt.f32 %v76_v22  ;;  %v101_v25 = vmul.f32 0.1, %v94_v23 }
  0x63   :  { %v102_v27 = vadd.f32 %v101_v25, %v100_v24 }
  0x65   :  { %104 = vst [vmem:[#allocation10] sm:$0x1] %v102_v27 }
  0x66   :  { %252 = shalt.err (!%p249_p12)
}
  0x67   :  { %s265_s28 = scalar_lea.hbm %s428_s7, 64  ;;  %s255_s9 = scalar_lea.hbm %s428_s7, 128 }
  0x68   :  { %p254_p13 = scmp.ne.s32.totalorder %s157_s24, %s265_s28  ;;  %p256_p0 = scmp.lt.u32.totalorder %s157_s24, %s428_s7 }
  0x69   :  { %p257_p1 = scmp.lt.u32.totalorder %s255_s9, %s265_s28  ;;  %p259_p3 = scmp.lt.u32.totalorder %s265_s28, %s157_s24 }
  0x6b   :  { %p258_p2 = por %p257_p1, %p256_p0 }
  0x6d   :  { %p260_p4 = por %p259_p3, %p258_p2 }
  0x6f   :  { %p261_p5 = pnand %p260_p4, %p254_p13 }
  0x71   :  { %264 = shalt.err (!%p261_p5)
}
  0x72   :  { %140 = dma.vmem_to_hbm [thread:$0]  %s138_s22, 16, %s157_s24, [#allocation9]   ;;  %v78_v29 = vld [vmem:[%s422_s1] sm:$0x1]  ;;  %v83_v30 = vsub.s32 0, %v82_v28  ;;  %v165_v31 = vpop.eup %164 }
  0x73   :  { %v80_v32 = vmul.f32 %v165_v31, %v78_v29  ;;  %v158_v34 = vld [vmem:[%s423_s2] ss:$0 sm:$0xff]  ;;  %s300_s7 = smov [#allocation7]  }
  0x74   :  { %s111_s14 = sshll.u32 %s300_s7, 4  ;;  %s112_s14 = int_to_ptr.vmem [resolvable:$true] %s111_s14 }
  0x75   :  { %v84_v33 = vrot.slane %v80_v32, %v83_v30  ;;  %s266_s15 = scalar_lea.vmem %s112_s14, 128  ;;  %p271_p7 = scmp.lt.s32.totalorder %s112_s14, %s112_s14 }
  0x76   :  { %p267_p6 = scmp.ne.s32.totalorder %s112_s14, %s266_s15  ;;  %p272_p8 = scmp.lt.s32.totalorder %s266_s15, %s266_s15 }
  0x77   :  { %v85_v35 = vmul.f32 %v84_v33, %v374_v11 }
  0x78   :  { %p273_p9 = por %p272_p8, %p271_p7 }
  0x79   :  { %v92_v36 = vadd.f32 %v158_v34, %v85_v35 }
  0x7a   :  { %p274_p10 = pnand %p273_p9, %p267_p6 }
  0x7b   :  { %93 = vst [vmem:[#allocation7] sm:$0xff] %v92_v36 }
  0x7c   :  { %277 = shalt.err (!%p274_p10)
}
  0x7d   :  { %s278_s17 = scalar_lea.hbm %s426_s5, 128 }
  0x7e   :  { %p279_p11 = scmp.ne.s32.totalorder %s426_s5, %s278_s17  ;;  %p282_p12 = scmp.lt.u32.totalorder %s278_s17, %s426_s5 }
  0x80   :  { %p284_p13 = pnand %p282_p12, %p279_p11 }
  0x82   :  { %287 = shalt.err (!%p284_p13)
}
  0x83   :  { %114 = dma.vmem_to_hbm [thread:$0]  %s112_s14, 128, %s426_s5, [#allocation4]  }
  0x84   :  { %292 = dma.done.wait [#allocation4], 128  }
  0x85   :  { %293 = vsyncadd [#allocation4], 4294967168 }
  0x86   :  { %294 = dma.done.wait [#allocation9], 32  }
  0x87   :  { %295 = vsyncadd [#allocation9], 4294967264 }
  0x88   :  { %150 = vsyncpa [#allocation3], 1 }
  0x89   :  { %151 = vsyncpa [#allocation6], 1 }
  0x8a   :  { %152 = vsyncpa [#allocation4], 1 }
  0x8b   :  { %153 = vsyncpa [#allocation9], 1 }

</bundles_post_ra>
